<compile_context>
chip_gen: v5e
topology: v5e:2x2
jax: 0.10.0
libtpu: 0.0.40
codegen_flags: <defaults>
</compile_context>

<pallas_src>
import functools
import math

import jax
import jax.numpy as jnp
from jax import lax
from jax.experimental import pallas as pl
from jax.experimental.pallas import tpu as pltpu

_LANES = 128
_F32_EPS = float(jnp.finfo(jnp.float32).eps)


def _newton_maxent_kernel(mu_ref, lam0_ref, x_ref, lam_out_ref, *,
                          n_valid, max_iter, tol):
    """Whole Newton solve in a single kernel invocation (no grid; latency-bound).

    x_ref       : (rows, 128) f32 VMEM, zero-padded sample vector
    mu_ref      : (1,) f32 SMEM, target mean
    lam0_ref    : (1,) f32 SMEM, initial multiplier
    lam_out_ref : (1,) f32 SMEM, solved multiplier
    """
    x = x_ref[...]                        # only loop-resident array
    mu = mu_ref[0]
    lam0 = lam0_ref[0]
    rows, lanes = x.shape
    n_pad = rows * lanes - n_valid

    # ---- loop-invariant setup (computed exactly once) -----------------------
    f32_big = jnp.float32(jnp.finfo(jnp.float32).max)
    if n_pad > 0:
        flat_id = (lax.broadcasted_iota(jnp.int32, (rows, lanes), 0) * lanes
                   + lax.broadcasted_iota(jnp.int32, (rows, lanes), 1))
        valid = flat_id < n_valid
        mask_f = valid.astype(jnp.float32)          # pads contribute exactly 0
        x_min = jnp.min(jnp.where(valid, x, f32_big))
        x_max = jnp.max(jnp.where(valid, x, -f32_big))
    else:
        mask_f = None                               # mask-free fast path
        x_min = jnp.min(x)
        x_max = jnp.max(x)

    # |f(lam)| > tol  <=>  |mu*S0 - S1| > (tol/e) * S0  (e^-1 and exp(-m) cancel)
    tol_e = jnp.float32(tol * math.exp(-1.0))
    # float32 noise floor of the cancellation mu*S0 - S1: makes the early exit
    # reachable (with tol=1e-15 alone the test is dead code in f32 and every
    # call would burn all max_iter iterations).
    rel_floor = jnp.float32(64.0 * _F32_EPS)

    def sums(lam):
        # Exact overflow-proof shift from hoisted scalars (no per-iter max-reduce):
        # m = max over valid x of (-lam*x) is attained at an endpoint.
        neg_lam = -lam
        m = jnp.maximum(neg_lam * x_min, neg_lam * x_max)
        z = neg_lam * x - m                         # <= 0 on all valid elements
        if mask_f is None:
            w = jnp.exp(z)                          # EUP
        else:
            # clamp keeps padded lanes (x == 0) from overflowing before the
            # multiplicative mask zeroes them out exactly
            w = jnp.exp(jnp.minimum(z, 0.0)) * mask_f
        xw = x * w
        s0 = jnp.sum(w)                             # XLU reductions -> scalars
        s1 = jnp.sum(xw)
        s2 = jnp.sum(xw * x)
        # TODO(synk): on v6e/v7x (2 homogeneous XLUs) experiment with fusing the
        # three reductions (stack + single reduce, or an MXU GEMV against a
        # hoisted [1, x, x^2] basis); kept separate here (safe, and preferred
        # on v5e's 3 heterogeneous XLUs).
        return s0, s1, s2

    def newton_state(s0, s1, s2):
        num = mu * s0 - s1                          # ∝ f(lam)  * S0
        den = s2 + s0                               # ∝ f'(lam) * S0  (>= s0 >= 1)
        thresh = jnp.maximum(tol_e * s0,
                             rel_floor * (jnp.abs(mu) * s0 + jnp.abs(s1)))
        return num, den, thresh

    # carry = (lam, num, den, thresh, i): one exp + three reductions + one
    # scalar divide per Newton step; cond() reads carried scalars only.
    def cond(carry):
        _, num, _, thresh, i = carry
        return jnp.logical_and(jnp.abs(num) > thresh, i <= max_iter)

    def body(carry):
        lam, num, den, _, i = carry
        # TODO(synk): pl.reciprocal(den, approx=True) would move this divide to
        # the EUP, but the Mosaic approx-reciprocal lowering wants a vector
        # operand and `den` is a true scalar here, so keep the scalar divide.
        lam_new = lam - num / den
        s0, s1, s2 = sums(lam_new)
        num_n, den_n, thresh_n = newton_state(s0, s1, s2)
        return (lam_new, num_n, den_n, thresh_n, i + jnp.int32(1))

    s0, s1, s2 = sums(lam0)
    num0, den0, thresh0 = newton_state(s0, s1, s2)
    carry0 = (lam0, num0, den0, thresh0, jnp.int32(0))
    lam_fin, _, _, _, _ = lax.while_loop(cond, body, carry0)
    lam_out_ref[0] = lam_fin


def maxent_newton_solve(x, mu, lam0=0.0, max_iter=100, tol=1e-15):
    """Equivalent of MeanMaxEnt_Model.forward; returns the solved `lam`
    (the reference stores it on `self.lam`)."""
    x = jnp.asarray(x, jnp.float32).reshape(-1)
    n = int(x.shape[0])
    rows = -(-n // _LANES)                 # ceil(n/128): minimal lane padding
    n_pad = rows * _LANES - n
    if n_pad:
        x_pad = jnp.zeros((rows * _LANES,), jnp.float32).at[:n].set(x)
    else:
        x_pad = x
    x_pad = x_pad.reshape(rows, _LANES)

    mu_arr = jnp.asarray([mu], jnp.float32)          # (1,) SMEM scalar
    lam_arr = jnp.asarray([lam0], jnp.float32)       # (1,) SMEM scalar

    # x is the only loop-resident array (~4*N bytes of VMEM): fits the default
    # scoped VMEM limit up to N of a few million on every generation.
    # TODO(synk): for very large N chunk the per-iteration reductions over rows
    # with an inner fori_loop and raise vmem_limit_bytes; for batched problems
    # add a leading grid axis with dimension_semantics=("parallel",) so both of
    # v7x's TensorCores are used.
    lam = pl.pallas_call(
        functools.partial(_newton_maxent_kernel,
                          n_valid=n, max_iter=max_iter, tol=tol),
        out_shape=jax.ShapeDtypeStruct((1,), jnp.float32),
        in_specs=[
            pl.BlockSpec(memory_space=pltpu.MemorySpace.SMEM),   # mu
            pl.BlockSpec(memory_space=pltpu.MemorySpace.SMEM),   # lam0
            pl.BlockSpec(memory_space=pltpu.MemorySpace.VMEM),   # x (full block)
        ],
        out_specs=pl.BlockSpec(memory_space=pltpu.MemorySpace.SMEM),
    )(mu_arr, lam_arr, x_pad)
    return lam[0]


def _maxent_newton_ref(x, mu, lam0=0.0, max_iter=100, tol=1e-15):
    """Pure-JAX float32 transcription of the original numpy reference loop."""
    x = jnp.asarray(x, jnp.float32)
    mu = jnp.float32(mu)
    inv_e = jnp.float32(math.exp(-1.0))

    def fx(lam):
        w = jnp.exp(-lam * x)
        return mu / inv_e - jnp.dot(x, w) / (inv_e * jnp.sum(w))

    def dfx(lam):
        w = jnp.exp(-lam * x)
        denom = inv_e * jnp.sum(w)
        return jnp.sum(x * x * w) / denom + jnp.sum(w) / denom

    def cond(c):
        lam, i = c
        return jnp.logical_and(jnp.abs(fx(lam)) > tol, i <= max_iter)

    def body(c):
        lam, i = c
        return (lam - fx(lam) / dfx(lam), i + 1)

    lam, _ = lax.while_loop(cond, body, (jnp.float32(lam0), jnp.int32(0)))
    return lam


def _check_case(key, n, mu):
    x = jax.random.uniform(key, (n,), dtype=jnp.float32, minval=0.1, maxval=1.0)
    lam = jax.block_until_ready(maxent_newton_solve(x, mu, lam0=0.0,
                                                    max_iter=100, tol=1e-15))
    assert bool(jnp.isfinite(lam)), f"non-finite lam: {lam}"

    # matches a straight float32 transcription of the reference
    lam_ref = jax.block_until_ready(_maxent_newton_ref(x, mu))
    assert abs(float(lam) - float(lam_ref)) < 5e-3, (n, float(lam), float(lam_ref))

    # ... and the solved multiplier actually enforces the mean constraint
    w = jnp.exp(-lam * x)
    implied_mean = float(jnp.sum(x * w) / jnp.sum(w))
    assert abs(implied_mean - mu) < 5e-2, (n, implied_mean, mu)


if __name__ == "__main__":
    key = jax.random.PRNGKey(0)
    k0, k1 = jax.random.split(key)

    # N multiple of 128 -> mask-free fast path
    _check_case(k0, n=256, mu=0.4)
    # N not a multiple of 128 -> exercises the exact padded-lane mask path
    _check_case(k1, n=200, mu=0.6)

    print("KERNEL_OK")
</pallas_src>

<mosaic_0001>
module attributes {stable_mosaic.version = 11 : i64} {
  func.func @_newton_maxent_kernel(%arg0: memref<1xf32, #tpu.memory_space<smem>>, %arg1: memref<1xf32, #tpu.memory_space<smem>>, %arg2: memref<2x128xf32, #tpu.memory_space<vmem>>, %arg3: memref<1xf32, #tpu.memory_space<smem>>) attributes {dimension_semantics = [], scalar_prefetch = 0 : i64, scratch_operands = 0 : i64, tpu.core_type = #tpu.core_type<tc>} {
    %c0 = arith.constant 0 : index
    %c0_0 = arith.constant 0 : index
    %0 = vector.load %arg2[%c0, %c0_0] : memref<2x128xf32, #tpu.memory_space<vmem>>, vector<2x128xf32>
    %c0_1 = arith.constant 0 : index
    %1 = memref.load %arg0[%c0_1] : memref<1xf32, #tpu.memory_space<smem>>
    %c0_2 = arith.constant 0 : index
    %2 = memref.load %arg1[%c0_2] : memref<1xf32, #tpu.memory_space<smem>>
    %3 = vector.shape_cast %0 : vector<2x128xf32> to vector<1x2x128xf32>
    %cst = arith.constant dense<0x7F800000> : vector<1xf32>
    %4 = vector.multi_reduction <minimumf>, %3, %cst [1, 2] : vector<1x2x128xf32> to vector<1xf32>
    %5 = vector.shape_cast %4 : vector<1xf32> to vector<1x1x1xf32>
    %6 = vector.extract %5[0, 0, 0] : f32 from vector<1x1x1xf32>
    %7 = vector.shape_cast %0 : vector<2x128xf32> to vector<1x2x128xf32>
    %cst_3 = arith.constant dense<0xFF800000> : vector<1xf32>
    %8 = vector.multi_reduction <maximumf>, %7, %cst_3 [1, 2] : vector<1x2x128xf32> to vector<1xf32>
    %9 = vector.shape_cast %8 : vector<1xf32> to vector<1x1x1xf32>
    %10 = vector.extract %9[0, 0, 0] : f32 from vector<1x1x1xf32>
    %cst_4 = arith.constant 0.000000e+00 : f32
    %11 = arith.subf %cst_4, %2 : f32
    %12 = arith.mulf %11, %6 : f32
    %13 = arith.mulf %11, %10 : f32
    %14 = arith.maximumf %12, %13 : f32
    %15 = vector.broadcast %11 : f32 to vector<2x128xf32>
    %16 = arith.mulf %15, %0 : vector<2x128xf32>
    %17 = vector.broadcast %14 : f32 to vector<2x128xf32>
    %18 = arith.subf %16, %17 : vector<2x128xf32>
    %19 = math.exp %18 : vector<2x128xf32>
    %20 = arith.mulf %0, %19 : vector<2x128xf32>
    %21 = vector.shape_cast %19 : vector<2x128xf32> to vector<1x2x128xf32>
    %cst_5 = arith.constant dense<0.000000e+00> : vector<1xf32>
    %22 = vector.multi_reduction <add>, %21, %cst_5 [1, 2] : vector<1x2x128xf32> to vector<1xf32>
    %23 = vector.shape_cast %22 : vector<1xf32> to vector<1x1x1xf32>
    %24 = vector.extract %23[0, 0, 0] : f32 from vector<1x1x1xf32>
    %25 = vector.shape_cast %20 : vector<2x128xf32> to vector<1x2x128xf32>
    %cst_6 = arith.constant dense<0.000000e+00> : vector<1xf32>
    %26 = vector.multi_reduction <add>, %25, %cst_6 [1, 2] : vector<1x2x128xf32> to vector<1xf32>
    %27 = vector.shape_cast %26 : vector<1xf32> to vector<1x1x1xf32>
    %28 = vector.extract %27[0, 0, 0] : f32 from vector<1x1x1xf32>
    %29 = arith.mulf %20, %0 : vector<2x128xf32>
    %30 = vector.shape_cast %29 : vector<2x128xf32> to vector<1x2x128xf32>
    %cst_7 = arith.constant dense<0.000000e+00> : vector<1xf32>
    %31 = vector.multi_reduction <add>, %30, %cst_7 [1, 2] : vector<1x2x128xf32> to vector<1xf32>
    %32 = vector.shape_cast %31 : vector<1xf32> to vector<1x1x1xf32>
    %33 = vector.extract %32[0, 0, 0] : f32 from vector<1x1x1xf32>
    %34 = arith.mulf %1, %24 : f32
    %35 = arith.subf %34, %28 : f32
    %36 = arith.addf %33, %24 : f32
    %cst_8 = arith.constant 3.67879432E-16 : f32
    %37 = arith.mulf %cst_8, %24 : f32
    %38 = math.absf %1 : f32
    %39 = arith.mulf %38, %24 : f32
    %40 = math.absf %28 : f32
    %41 = arith.addf %39, %40 : f32
    %cst_9 = arith.constant 7.62939453E-6 : f32
    %42 = arith.mulf %cst_9, %41 : f32
    %43 = arith.maximumf %37, %42 : f32
    %cst_10 = arith.constant 3.67879432E-16 : f32
    %cst_11 = arith.constant 7.62939453E-6 : f32
    %c0_i32 = arith.constant 0 : i32
    %44:5 = scf.while (%arg4 = %2, %arg5 = %35, %arg6 = %36, %arg7 = %43, %arg8 = %c0_i32) : (f32, f32, f32, f32, i32) -> (f32, f32, f32, f32, i32) {
      %46 = math.absf %arg5 : f32
      %47 = arith.cmpf ogt, %46, %arg7 : f32
      %c100_i32 = arith.constant 100 : i32
      %48 = arith.cmpi sle, %arg8, %c100_i32 : i32
      %49 = arith.andi %47, %48 : i1
      scf.condition(%49) %arg4, %arg5, %arg6, %arg7, %arg8 : f32, f32, f32, f32, i32
    } do {
    ^bb0(%arg4: f32, %arg5: f32, %arg6: f32, %arg7: f32, %arg8: i32):
      %46 = arith.divf %arg5, %arg6 : f32
      %47 = arith.subf %arg4, %46 : f32
      %cst_13 = arith.constant 0.000000e+00 : f32
      %48 = arith.subf %cst_13, %47 : f32
      %49 = arith.mulf %48, %6 : f32
      %50 = arith.mulf %48, %10 : f32
      %51 = arith.maximumf %49, %50 : f32
      %52 = vector.broadcast %48 : f32 to vector<2x128xf32>
      %53 = arith.mulf %52, %0 : vector<2x128xf32>
      %54 = vector.broadcast %51 : f32 to vector<2x128xf32>
      %55 = arith.subf %53, %54 : vector<2x128xf32>
      %56 = math.exp %55 : vector<2x128xf32>
      %57 = arith.mulf %0, %56 : vector<2x128xf32>
      %58 = vector.shape_cast %56 : vector<2x128xf32> to vector<1x2x128xf32>
      %cst_14 = arith.constant dense<0.000000e+00> : vector<1xf32>
      %59 = vector.multi_reduction <add>, %58, %cst_14 [1, 2] : vector<1x2x128xf32> to vector<1xf32>
      %60 = vector.shape_cast %59 : vector<1xf32> to vector<1x1x1xf32>
      %61 = vector.extract %60[0, 0, 0] : f32 from vector<1x1x1xf32>
      %62 = vector.shape_cast %57 : vector<2x128xf32> to vector<1x2x128xf32>
      %cst_15 = arith.constant dense<0.000000e+00> : vector<1xf32>
      %63 = vector.multi_reduction <add>, %62, %cst_15 [1, 2] : vector<1x2x128xf32> to vector<1xf32>
      %64 = vector.shape_cast %63 : vector<1xf32> to vector<1x1x1xf32>
      %65 = vector.extract %64[0, 0, 0] : f32 from vector<1x1x1xf32>
      %66 = arith.mulf %57, %0 : vector<2x128xf32>
      %67 = vector.shape_cast %66 : vector<2x128xf32> to vector<1x2x128xf32>
      %cst_16 = arith.constant dense<0.000000e+00> : vector<1xf32>
      %68 = vector.multi_reduction <add>, %67, %cst_16 [1, 2] : vector<1x2x128xf32> to vector<1xf32>
      %69 = vector.shape_cast %68 : vector<1xf32> to vector<1x1x1xf32>
      %70 = vector.extract %69[0, 0, 0] : f32 from vector<1x1x1xf32>
      %71 = arith.mulf %1, %61 : f32
      %72 = arith.subf %71, %65 : f32
      %73 = arith.addf %70, %61 : f32
      %74 = arith.mulf %cst_10, %61 : f32
      %75 = math.absf %1 : f32
      %76 = arith.mulf %75, %61 : f32
      %77 = math.absf %65 : f32
      %78 = arith.addf %76, %77 : f32
      %79 = arith.mulf %cst_11, %78 : f32
      %80 = arith.maximumf %74, %79 : f32
      %c1_i32 = arith.constant 1 : i32
      %81 = arith.addi %arg8, %c1_i32 : i32
      scf.yield %47, %72, %73, %80, %81 : f32, f32, f32, f32, i32
    }
    %c0_12 = arith.constant 0 : index
    %45 = memref.load %arg3[%c0_12] : memref<1xf32, #tpu.memory_space<smem>>
    memref.store %44#0, %arg3[%c0_12] : memref<1xf32, #tpu.memory_space<smem>>
    return
  }
}

</mosaic_0001>

<bundles_post_ra>
// kernel: tpu_custom_call.1
= control target key start
LH: loop header
LB: loop body
LE: loop exit
PB: predicated region body
PF: predicated region fallthrough
CT: control target
= control target key end

     0   :  { %vm20_vm0 = vcmask 1041408   ;;  %s447_s0 = inlined_call_operand.<no memory space> [shape: f32[1], index: 0, kind: input, shape index: {}]   ;;  %s448_s1 = inlined_call_operand.<no memory space> [shape: f32[1], index: 1, kind: input, shape index: {}]   ;;  %s449_s2 = inlined_call_operand.vmem [shape: f32[2,128], index: 2, kind: input, shape index: {}]   ;;  %s450_s3 = inlined_call_operand.hbm [shape: f32[1], index: 3, kind: output, shape index: {}]  }
   0x1   :  { %v355_v0 = vld [vmem:[%s449_s2] sm:$0x3] }
   0x2   :  { %10 = vsyncpa [#allocation5], 0  ;;  %v21_v1 = vsel %vm20_vm0, %v355_v0, inf  ;;  %v31_v2 = vsel %vm20_vm0, %v355_v0, -inf  ;;  %s41_s15 = ssub.f32 0.0, %s448_s1 }
   0x3   :  { %22 = vmin.xlane.f32.xlu0 %v21_v1  ;;  %s87_s24 = sand.u32 2147483647, %s447_s0 }
   0x4   :  { %v45_v17 = vstv %s41_s15 }
   0x5   :  { %v46_v18 = vmul.f32 %v45_v17, %v355_v0 }
   0xb   :  { %32 = vmax.xlane.f32.xlu0 %v31_v2 }
  0x76   :  { %v23_v3 = vpop.xlane.xlu0 %22 }
  0x77   :  { %v24_v4 = vrot.slane %v23_v3, 4 }
  0x79   :  { %v25_v5 = vmin.f32 %v23_v3, %v24_v4 }
  0x7b   :  { %v26_v6 = vrot.slane %v25_v5, 2 }
  0x7d   :  { %v27_v7 = vmin.f32 %v25_v5, %v26_v6 }
  0x7e   :  { %v33_v8 = vpop.xlane.xlu0 %32 }
  0x7f   :  { %v34_v9 = vrot.slane %v33_v8, 4  ;;  %v28_v10 = vrot.slane %v27_v7, 1 }
  0x81   :  { %v35_v11 = vmax.f32 %v33_v8, %v34_v9  ;;  %v29_v12 = vmin.f32 %v27_v7, %v28_v10 }
  0x83   :  { %v36_v13 = vrot.slane %v35_v11, 2  ;;  %212 = vpush %v29_v12 }
  0x85   :  { %v37_v14 = vmax.f32 %v35_v11, %v36_v13 }
  0x87   :  { %v38_v15 = vrot.slane %v37_v14, 1 }
  0x89   :  { %v39_v16 = vmax.f32 %v37_v14, %v38_v15 }
  0x8b   :  { %214 = vpush %v39_v16 }
  0xb4   :  { %s364_s16 = spop %212 }
  0xb5   :  { %s42_s17 = smul.f32 %s364_s16, %s41_s15 }
  0xbc   :  { %s367_s18 = spop %214 }
  0xbd   :  { %s43_s19 = smul.f32 %s367_s18, %s41_s15  ;;  %s451_s15 = smov %s448_s1 }
  0xbf   :  { %s44_s20 = smax.f32 %s43_s19, %s42_s17 }
  0xc0   :  { %v47_v19 = vstv %s44_s20 }
  0xc1   :  { %v48_v20 = vsub.f32 %v46_v18, %v47_v19 }
  0xc3   :  { %v49_v21 = vmul.f32 1.442695, %v48_v20 }
  0xc5   :  { %271 = vpow2.f32 %v49_v21 }
  0xcb   :  { %v272_v22 = vpop.eup %271 }
  0xcc   :  { %v52_v23 = vsel %vm20_vm0, %v272_v22, 0.0  ;;  %v51_v24 = vmul.f32 %v272_v22, %v355_v0 }
  0xcd   :  { %53 = vadd.xlane.f32.xlu1 %v52_v23 }
  0xce   :  { %v72_v25 = vmul.f32 %v51_v24, %v355_v0  ;;  %v62_v27 = vsel %vm20_vm0, %v51_v24, 0.0 }
  0xd0   :  { %v73_v26 = vsel %vm20_vm0, %v72_v25, 0.0 }
  0xd1   :  { %74 = vadd.xlane.f32.xlu2 %v73_v26 }
  0xd5   :  { %63 = vadd.xlane.f32.xlu1 %v62_v27 }
 0x140   :  { %v54_v28 = vpop.xlane.xlu1 %53 }
 0x141   :  { %v55_v29 = vrot.slane %v54_v28, 4 }
 0x143   :  { %v56_v30 = vadd.f32 %v55_v29, %v54_v28 }
 0x144   :  { %v75_v31 = vpop.xlane.xlu2 %74 }
 0x145   :  { %v57_v32 = vrot.slane %v56_v30, 2  ;;  %v76_v33 = vrot.slane %v75_v31, 4 }
 0x147   :  { %v77_v34 = vadd.f32 %v76_v33, %v75_v31  ;;  %v58_v35 = vadd.f32 %v57_v32, %v56_v30 }
 0x148   :  { %v64_v36 = vpop.xlane.xlu1 %63 }
 0x149   :  { %v78_v37 = vrot.slane %v77_v34, 2  ;;  %v65_v38 = vrot.slane %v64_v36, 4  ;;  %v59_v39 = vrot.slane %v58_v35, 1 }
 0x14b   :  { %v66_v40 = vadd.f32 %v65_v38, %v64_v36  ;;  %v60_v41 = vadd.f32 %v59_v39, %v58_v35  ;;  %v79_v42 = vadd.f32 %v78_v37, %v77_v34 }
 0x14d   :  { %v67_v43 = vrot.slane %v66_v40, 2  ;;  %216 = vpush %v60_v41  ;;  %v80_v45 = vrot.slane %v79_v42, 1 }
 0x14f   :  { %v68_v44 = vadd.f32 %v67_v43, %v66_v40  ;;  %v81_v48 = vadd.f32 %v80_v45, %v79_v42 }
 0x151   :  { %v69_v46 = vrot.slane %v68_v44, 1 }
 0x153   :  { %v70_v47 = vadd.f32 %v69_v46, %v68_v44 }
 0x155   :  { %218 = vpush %v70_v47 }
 0x156   :  { %220 = vpush %v81_v48 }
 0x17e   :  { %s217_s21 = spop %216 }
 0x17f   :  { %s83_s27 = smul.f32 %s217_s21, %s447_s0 }
 0x180   :  { %s88_s4 = smul.f32 %s217_s21, %s87_s24 }
 0x181   :  { %s86_s9 = smul.f32 3.6787943e-16, %s217_s21 }
 0x186   :  { %s219_s28 = spop %218 }
 0x187   :  { %s84_s5 = ssub.f32 %s83_s27, %s219_s28   ;;  %s89_s6 = sand.u32 2147483647, %s219_s28 }
 0x188   :  { %s90_s7 = sadd.f32 %s89_s6, %s88_s4  ;;  %s221_s8 = spop %220 }
 0x189   :  { %s85_s10 = sadd.f32 %s221_s8, %s217_s21   ;;  %s198_s13 = sand.u32 2147483647, %s84_s5 }
 0x18a   :  { %s91_s11 = smul.f32 7.6293945e-06, %s90_s7 }
 0x18c   :  { %s92_s12 = smax.f32 %s91_s11, %s86_s9 }
 0x18d   :  { %p199_p0 = scmp.gt.f32.partialorder %s198_s13, %s92_s12 }
 0x18e   :  { %s391_s17 = smov (%p199_p0), 0  }
 0x18f   :  { %202 = sbr.rel (!%p199_p0) target bundleno = 697 (0x2b9), region = 34 }
 0x194 LB: > { %v106_v49 = vstv %s317_s10  ;;  %s325_s1 = sphi %s448_s1, %s454_s1   ;;  %s321_s5 = sphi %s84_s5, %s167_s5   ;;  %s317_s10 = sphi %s85_s10, %s168_s10   ;;  %s313_s17 = sphi %s391_s17, %s453_s17  }
 0x195   : > { %273 = vrcp.f32 %v106_v49  ;;  %v118_v52 = vand.u32 2147483648, %v106_v49  ;;  %vm112_vm1 = vweird.f32 %v106_v49  ;;  %v116_v54 = vand.u32 2147483647, %v106_v49 }
 0x197   : > { %v119_v56 = vor.u32 1.1754944e-38, %v118_v52  ;;  %vm117_vm4 = vcmp.eq.f32.partialorder %v116_v54, 8.507059e+37 }
 0x19b   : > { %v274_v50 = vpop.eup %273 }
 0x19c   : > { %v108_v51 = vmul.f32 %v274_v50, %v106_v49  ;;  %vm113_vm2 = vweird.f32 %v274_v50 }
 0x19d   : > { %vm114_vm3 = vmor %vm112_vm1, %vm113_vm2 }
 0x19e   : > { %v109_v53 = vsub.f32 1.0, %v108_v51 }
 0x1a0   : > { %v110_v55 = vmul.f32 %v274_v50, %v109_v53 }
 0x1a2   : > { %v111_v57 = vadd.f32 %v274_v50, %v110_v55 }
 0x1a4   : > { %v115_v58 = vsel %vm114_vm3, %v274_v50, %v111_v57 }
 0x1a5   : > { %v120_v59 = vsel %vm117_vm4, %v119_v56, %v115_v58 }
 0x1a6   : > { %222 = vpush %v120_v59 }
 0x1d7   : > { %s223_s21 = spop %222 }
 0x1d8   : > { %s122_s22 = smul.f32 %s321_s5, %s223_s21 }
 0x1da   : > { %s408_s1 = ssub.f32 %s325_s1, %s122_s22  }
 0x1dc   : > { %s452_s23 = smov %s408_s1  ;;  %s175_s1 = sadd.s32 1, %s313_s17  }
 0x1dd   : > { %s124_s25 = ssub.f32 0.0, %s452_s23  ;;  %p101_p1 = scmp.le.s32.totalorder %s175_s1, 100 }
 0x1de   : > { %s453_s17 = smov %s175_s1  ;;  %s454_s1 = smov %s452_s23 }
 0x1df   : > { %s125_s26 = smul.f32 %s364_s16, %s124_s25  ;;  %v128_v60 = vstv %s124_s25 }
 0x1e0   : > { %s126_s27 = smul.f32 %s367_s18, %s124_s25  ;;  %v129_v61 = vmul.f32 %v128_v60, %v355_v0 }
 0x1e2   : > { %s127_s28 = smax.f32 %s126_s27, %s125_s26 }
 0x1e3   : > { %v130_v62 = vstv %s127_s28 }
 0x1e4   : > { %v131_v63 = vsub.f32 %v129_v61, %v130_v62 }
 0x1e6   : > { %v132_v1 = vmul.f32 1.442695, %v131_v63 }
 0x1e8   : > { %275 = vpow2.f32 %v132_v1 }
 0x1ee   : > { %v276_v2 = vpop.eup %275 }
 0x1ef   : > { %v135_v3 = vsel %vm20_vm0, %v276_v2, 0.0  ;;  %v134_v4 = vmul.f32 %v276_v2, %v355_v0 }
 0x1f0   : > { %136 = vadd.xlane.f32.xlu0 %v135_v3 }
 0x1f1   : > { %v155_v5 = vmul.f32 %v134_v4, %v355_v0  ;;  %v145_v7 = vsel %vm20_vm0, %v134_v4, 0.0 }
 0x1f3   : > { %v156_v6 = vsel %vm20_vm0, %v155_v5, 0.0 }
 0x1f4   : > { %157 = vadd.xlane.f32.xlu1 %v156_v6 }
 0x1f8   : > { %146 = vadd.xlane.f32.xlu0 %v145_v7 }
 0x263   : > { %v137_v8 = vpop.xlane.xlu0 %136 }
 0x264   : > { %v138_v9 = vrot.slane %v137_v8, 4 }
 0x266   : > { %v139_v10 = vadd.f32 %v138_v9, %v137_v8 }
 0x267   : > { %v158_v11 = vpop.xlane.xlu1 %157 }
 0x268   : > { %v140_v12 = vrot.slane %v139_v10, 2  ;;  %v159_v13 = vrot.slane %v158_v11, 4 }
 0x26a   : > { %v160_v14 = vadd.f32 %v159_v13, %v158_v11  ;;  %v141_v15 = vadd.f32 %v140_v12, %v139_v10 }
 0x26b   : > { %v147_v16 = vpop.xlane.xlu0 %146 }
 0x26c   : > { %v161_v17 = vrot.slane %v160_v14, 2  ;;  %v148_v18 = vrot.slane %v147_v16, 4  ;;  %v142_v19 = vrot.slane %v141_v15, 1 }
 0x26e   : > { %v149_v20 = vadd.f32 %v148_v18, %v147_v16  ;;  %v143_v21 = vadd.f32 %v142_v19, %v141_v15  ;;  %v162_v22 = vadd.f32 %v161_v17, %v160_v14 }
 0x270   : > { %v150_v23 = vrot.slane %v149_v20, 2  ;;  %224 = vpush %v143_v21  ;;  %v163_v25 = vrot.slane %v162_v22, 1 }
 0x272   : > { %v151_v24 = vadd.f32 %v150_v23, %v149_v20  ;;  %v164_v28 = vadd.f32 %v163_v25, %v162_v22 }
 0x274   : > { %v152_v26 = vrot.slane %v151_v24, 1 }
 0x276   : > { %v153_v27 = vadd.f32 %v152_v26, %v151_v24 }
 0x278   : > { %226 = vpush %v153_v27 }
 0x279   : > { %228 = vpush %v164_v28 }
 0x2a1   : > { %s225_s29 = spop %224 }
 0x2a2   : > { %s166_s5 = smul.f32 %s225_s29, %s447_s0 }
 0x2a3   : > { %s170_s9 = smul.f32 %s225_s29, %s87_s24 }
 0x2a4   : > { %s169_s13 = smul.f32 3.6787943e-16, %s225_s29 }
 0x2a9   : > { %s227_s6 = spop %226 }
 0x2aa   : > { %s167_s5 = ssub.f32 %s166_s5, %s227_s6   ;;  %s171_s10 = sand.u32 2147483647, %s227_s6 }
 0x2ab   : > { %s172_s11 = sadd.f32 %s171_s10, %s170_s9  ;;  %s229_s12 = spop %228 }
 0x2ac   : > { %s168_s10 = sadd.f32 %s229_s12, %s225_s29   ;;  %s99_s15 = sand.u32 2147483647, %s167_s5 }
 0x2ad   : > { %s173_s2 = smul.f32 7.6293945e-06, %s172_s11 }
 0x2af   : > { %s174_s14 = smax.f32 %s173_s2, %s169_s13 }
 0x2b0   : > { %p100_p2 = scmp.gt.f32.partialorder %s99_s15, %s174_s14 }
 0x2b2   : > { %p102_p3 = pnand %p101_p1, %p100_p2 }
 0x2b3   :  { %s455_s15 = smov (%p102_p3), %s452_s23 }
 0x2b4   :  { %105 = sbr.rel (!%p102_p3) target bundleno = 404 (0x194), region = 40 }
 0x2b9 PF:  { %177 = sst [smem:[#allocation4]] %s329_s15  ;;  %s183_s21 = sshll.u32 %s450_s3, 4  ;;  %s329_s15 = sphi %s451_s15, %s455_s15   ;;  %s184_s21 = int_to_ptr.hbm [resolvable:$true] %s183_s21 }
 0x2ba   :  { %s331_s22 = smov [#allocation4]  }
 0x2bb   :  { %186 = dma.smem_to_hbm %s331_s22, 16, %s184_s21, [#allocation5]  }
 0x2bc   :  { %309 = dma.done.wait [#allocation5], 16  }
 0x2bd   :  { %310 = vsyncadd [#allocation5], 4294967280 }
 0x2be   :  { %191 = sfence }
 0x2bf   :  { %192 = vsyncpa [#allocation5], 1 }

</bundles_post_ra>
